<compile_context>
chip_gen: v7x
topology: tpu7x:2x2x1
jax: 0.10.0
libtpu: 0.0.40
codegen_flags: <defaults>
</compile_context>

<pallas_src>
import jax
import jax.numpy as jnp
from jax.experimental import pallas as pl
from jax.experimental.pallas import tpu as pltpu


def risk_mlp_kernel(x_ref, w1_ref, b1_ref, w2_ref, b2_ref, w3_ref, b3_ref, o_ref):
    """Fused 3-layer MLP forward for one batch tile.

    x_ref: (tile, 9) f32 (cast to bf16 in-kernel)
    w1_ref: (9, 64) bf16    b1_ref: (1, 64) f32
    w2_ref: (64, 32) bf16   b2_ref: (1, 32) f32
    w3_ref: (1, 32) bf16    b3_ref: (1, 1) f32 in SMEM
    o_ref:  (1, tile) f32   (lane-dense row; leading grid dim squeezed)
    """
    # Layer 1: cast x at the matmul boundary; MXU bf16 matmul, f32 accumulate.
    x = x_ref[...].astype(jnp.bfloat16)                               # (tile, 9)
    h1 = jnp.dot(x, w1_ref[...], preferred_element_type=jnp.float32)  # (tile, 64)
    h1 = jnp.maximum(h1 + b1_ref[...], 0.0)                           # f32

    # Layer 2.
    h2 = jnp.dot(h1.astype(jnp.bfloat16), w2_ref[...],
                 preferred_element_type=jnp.float32)                  # (tile, 32)
    h2 = jnp.maximum(h2 + b2_ref[...], 0.0)                           # f32

    # Head (32 -> 1), produced lane-dense: (1,32) @ (tile,32)^T -> (1, tile).
    # Standard NT ("trans_b") matmul pattern; batch ends up on the lane axis
    # so the store is a full-width vst instead of width-1 masked stores.
    out_row = jax.lax.dot_general(
        w3_ref[...], h2.astype(jnp.bfloat16),
        dimension_numbers=(((1,), (1,)), ((), ())),
        preferred_element_type=jnp.float32)                           # (1, tile)
    o_ref[...] = (out_row + b3_ref[0, 0]).astype(o_ref.dtype)


def _round_up(a, m):
    return ((a + m - 1) // m) * m


def risk_model_forward(x, params, *, block_rows=2048):
    """Run the fused, batch-tiled Pallas kernel. x: (B, input_dim) float32."""
    w1, b1, w2, b2, w3, b3 = params
    B, D = x.shape

    # Tiny weight casts (negligible); x itself is NOT touched in the wrapper.
    w1_bf16 = w1.astype(jnp.bfloat16)
    w2_bf16 = w2.astype(jnp.bfloat16)
    w3_row = w3.reshape(1, -1).astype(jnp.bfloat16)   # (1, 32)
    b3_s = b3.reshape(1, 1).astype(jnp.float32)       # SMEM scalar

    # Tile selection:
    #  - B <= 512: one full-array block (no divisibility constraint, no pad).
    #  - else: tiles are multiples of 512, capped at block_rows, aiming for
    #    >= 2 balanced tiles so v7x's dual-TC "parallel" sharding engages.
    if B <= 512:
        tile, n_tiles = B, 1
    else:
        tile = min(block_rows, _round_up(pl.cdiv(B, 2), 512))
        n_tiles = pl.cdiv(B, tile)
    b_pad = n_tiles * tile

    x_in = x
    if b_pad != B:
        # Single pad pass only in the multi-tile leftover case; padded rows
        # produce garbage that is sliced off below.
        x_in = jnp.pad(x, ((0, b_pad - B), (0, 0)))

    pinned = lambda arr: pl.BlockSpec(arr.shape, lambda i: (0, 0))

    out = pl.pallas_call(
        risk_mlp_kernel,
        out_shape=jax.ShapeDtypeStruct((n_tiles, 1, tile), jnp.float32),
        grid=(n_tiles,),
        in_specs=[
            pl.BlockSpec((tile, D), lambda i: (i, 0)),        # x tile (streamed, f32)
            pinned(w1_bf16), pinned(b1),                      # weights resident
            pinned(w2_bf16), pinned(b2),
            pinned(w3_row),
            pl.BlockSpec((1, 1), lambda i: (0, 0), memory_space=pltpu.SMEM),
        ],
        # Lane-dense output row per tile; leading grid dim squeezed.
        out_specs=pl.BlockSpec((None, 1, tile), lambda i: (i, 0, 0)),
        compiler_params=pltpu.CompilerParams(
            dimension_semantics=("parallel",)),               # dual-TC on v7x
    )(x_in, w1_bf16, b1, w2_bf16, b2, w3_row, b3_s)

    return out.reshape(b_pad)[:B].reshape(B, 1)


def init_params(key, input_dim):
    """Deterministic init mimicking PyTorch nn.Linear default (U[-1/sqrt(fan_in), +])."""
    dims = [(input_dim, 64), (64, 32), (32, 1)]
    params = []
    for fan_in, fan_out in dims:
        kw, kb, key = jax.random.split(key, 3)
        bound = 1.0 / jnp.sqrt(float(fan_in))
        w = jax.random.uniform(kw, (fan_in, fan_out), jnp.float32, -bound, bound)
        b = jax.random.uniform(kb, (1, fan_out), jnp.float32, -bound, bound)
        params.extend([w, b])
    return tuple(params)


def reference_forward_matched(x, params):
    """Plain-JAX reference with the same bf16-matmul / f32-accum numerics."""
    w1, b1, w2, b2, w3, b3 = params
    h1 = jnp.dot(x.astype(jnp.bfloat16), w1.astype(jnp.bfloat16),
                 preferred_element_type=jnp.float32)
    h1 = jnp.maximum(h1 + b1, 0.0)
    h2 = jnp.dot(h1.astype(jnp.bfloat16), w2.astype(jnp.bfloat16),
                 preferred_element_type=jnp.float32)
    h2 = jnp.maximum(h2 + b2, 0.0)
    out = jnp.dot(h2.astype(jnp.bfloat16), w3.astype(jnp.bfloat16),
                  preferred_element_type=jnp.float32)
    return out + b3


def reference_forward_f32(x, params):
    """Full-f32 reference (module semantics) for a loose sanity check."""
    w1, b1, w2, b2, w3, b3 = params
    h1 = jnp.maximum(x @ w1 + b1, 0.0)
    h2 = jnp.maximum(h1 @ w2 + b2, 0.0)
    return h2 @ w3 + b3


if __name__ == "__main__":
    key = jax.random.PRNGKey(0)
    k_x, k_p = jax.random.split(key)

    # The PyTorch script feeds 9 standardized tabular features, batch of 20.
    input_dim = 9
    batch = 20
    x = jax.random.normal(k_x, (batch, input_dim), dtype=jnp.float32)

    params = init_params(k_p, input_dim)

    out = risk_model_forward(x, params)
    out = jax.block_until_ready(out)

    assert out.shape == (batch, 1), out.shape
    ref_matched = reference_forward_matched(x, params)
    ref_f32 = reference_forward_f32(x, params)
    assert jnp.allclose(out, ref_matched, atol=1e-4, rtol=1e-4), \
        "mismatch vs bf16-matched reference"
    assert jnp.allclose(out, ref_f32, atol=5e-2, rtol=5e-2), \
        "mismatch vs f32 reference (bf16 tolerance)"

    print("KERNEL_OK")
</pallas_src>

<mosaic_0001>
module attributes {stable_mosaic.version = 11 : i64} {
  func.func @risk_mlp_kernel(%arg0: i32, %arg1: memref<20x9xf32, #tpu.memory_space<vmem>>, %arg2: memref<9x64xbf16, #tpu.memory_space<vmem>>, %arg3: memref<1x64xf32, #tpu.memory_space<vmem>>, %arg4: memref<64x32xbf16, #tpu.memory_space<vmem>>, %arg5: memref<1x32xf32, #tpu.memory_space<vmem>>, %arg6: memref<1x32xbf16, #tpu.memory_space<vmem>>, %arg7: memref<1x1xf32, #tpu.memory_space<smem>>, %arg8: memref<1x1x20xf32, #tpu.memory_space<vmem>>) attributes {dimension_semantics = [#tpu.dimension_semantics<parallel>], iteration_bounds = array<i64: 1>, scalar_prefetch = 0 : i64, scratch_operands = 0 : i64, tpu.core_type = #tpu.core_type<tc>, window_params = [{transform_indices = @transform_0, window_bounds = array<i64: 20, 9>}, {pipeline_mode = #tpu.pipeline_mode<synchronous>, transform_indices = @transform_1, window_bounds = array<i64: 9, 64>}, {pipeline_mode = #tpu.pipeline_mode<synchronous>, transform_indices = @transform_2, window_bounds = array<i64: 1, 64>}, {pipeline_mode = #tpu.pipeline_mode<synchronous>, transform_indices = @transform_3, window_bounds = array<i64: 64, 32>}, {pipeline_mode = #tpu.pipeline_mode<synchronous>, transform_indices = @transform_4, window_bounds = array<i64: 1, 32>}, {pipeline_mode = #tpu.pipeline_mode<synchronous>, transform_indices = @transform_5, window_bounds = array<i64: 1, 32>}, {transform_indices = @transform_6, window_bounds = array<i64: 1, 1>}, {transform_indices = @transform_7, window_bounds = array<i64: 1, 1, 20>}]} {
    %c0 = arith.constant 0 : index
    %c0_0 = arith.constant 0 : index
    %0 = vector.load %arg1[%c0, %c0_0] : memref<20x9xf32, #tpu.memory_space<vmem>>, vector<20x9xf32>
    %1 = arith.truncf %0 : vector<20x9xf32> to vector<20x9xbf16>
    %c0_1 = arith.constant 0 : index
    %c0_2 = arith.constant 0 : index
    %2 = vector.load %arg2[%c0_1, %c0_2] : memref<9x64xbf16, #tpu.memory_space<vmem>>, vector<9x64xbf16>
    %cst = arith.constant dense<0.000000e+00> : vector<20x64xf32>
    %3 = tpu.matmul %1, %2, %cst {dimension_numbers = #tpu.dot_dimension_numbers<[1], [0], [0], [1], [0, 0, 1, 1], [], []>} : vector<20x9xbf16>, vector<9x64xbf16>, vector<20x64xf32> -> vector<20x64xf32>
    %c0_3 = arith.constant 0 : index
    %c0_4 = arith.constant 0 : index
    %4 = vector.load %arg3[%c0_3, %c0_4] : memref<1x64xf32, #tpu.memory_space<vmem>>, vector<1x64xf32>
    %5 = vector.broadcast %4 : vector<1x64xf32> to vector<20x64xf32>
    %6 = arith.addf %3, %5 : vector<20x64xf32>
    %cst_5 = arith.constant 0.000000e+00 : f32
    %7 = vector.broadcast %cst_5 : f32 to vector<20x64xf32>
    %8 = arith.maximumf %6, %7 : vector<20x64xf32>
    %9 = arith.truncf %8 : vector<20x64xf32> to vector<20x64xbf16>
    %c0_6 = arith.constant 0 : index
    %c0_7 = arith.constant 0 : index
    %10 = vector.load %arg4[%c0_6, %c0_7] : memref<64x32xbf16, #tpu.memory_space<vmem>>, vector<64x32xbf16>
    %cst_8 = arith.constant dense<0.000000e+00> : vector<20x32xf32>
    %11 = tpu.matmul %9, %10, %cst_8 {dimension_numbers = #tpu.dot_dimension_numbers<[1], [0], [0], [1], [0, 0, 1, 1], [], []>} : vector<20x64xbf16>, vector<64x32xbf16>, vector<20x32xf32> -> vector<20x32xf32>
    %c0_9 = arith.constant 0 : index
    %c0_10 = arith.constant 0 : index
    %12 = vector.load %arg5[%c0_9, %c0_10] : memref<1x32xf32, #tpu.memory_space<vmem>>, vector<1x32xf32>
    %13 = vector.broadcast %12 : vector<1x32xf32> to vector<20x32xf32>
    %14 = arith.addf %11, %13 : vector<20x32xf32>
    %cst_11 = arith.constant 0.000000e+00 : f32
    %15 = vector.broadcast %cst_11 : f32 to vector<20x32xf32>
    %16 = arith.maximumf %14, %15 : vector<20x32xf32>
    %c0_12 = arith.constant 0 : index
    %c0_13 = arith.constant 0 : index
    %17 = vector.load %arg6[%c0_12, %c0_13] : memref<1x32xbf16, #tpu.memory_space<vmem>>, vector<1x32xbf16>
    %18 = arith.truncf %16 : vector<20x32xf32> to vector<20x32xbf16>
    %cst_14 = arith.constant dense<0.000000e+00> : vector<1x20xf32>
    %19 = tpu.matmul %17, %18, %cst_14 {dimension_numbers = #tpu.dot_dimension_numbers<[1], [1], [0], [0], [0, 0, 1, 0], [], []>} : vector<1x32xbf16>, vector<20x32xbf16>, vector<1x20xf32> -> vector<1x20xf32>
    %c0_15 = arith.constant 0 : index
    %c0_16 = arith.constant 0 : index
    %20 = memref.load %arg7[%c0_15, %c0_16] : memref<1x1xf32, #tpu.memory_space<smem>>
    %21 = vector.broadcast %20 : f32 to vector<1x20xf32>
    %22 = arith.addf %19, %21 : vector<1x20xf32>
    %c0_17 = arith.constant 0 : index
    %c0_18 = arith.constant 0 : index
    %c0_19 = arith.constant 0 : index
    %23 = vector.load %arg8[%c0_17, %c0_18, %c0_19] : memref<1x1x20xf32, #tpu.memory_space<vmem>>, vector<1x1x20xf32>
    %24 = vector.shape_cast %23 : vector<1x1x20xf32> to vector<1x20xf32>
    %25 = vector.shape_cast %22 : vector<1x20xf32> to vector<1x1x20xf32>
    tpu.vector_store %arg8[%c0_17, %c0_18, %c0_19], %25 {strides = array<i32>} : memref<1x1x20xf32, #tpu.memory_space<vmem>>, vector<1x1x20xf32>,
    return
  }
  func.func @transform_0(%arg0: i32) -> (i32, i32) {
    %c0_i32 = arith.constant 0 : i32
    %c0_i32_0 = arith.constant 0 : i32
    return %arg0, %c0_i32 : i32, i32
  }
  func.func @transform_1(%arg0: i32) -> (i32, i32) {
    %c0_i32 = arith.constant 0 : i32
    %c0_i32_0 = arith.constant 0 : i32
    %c0_i32_1 = arith.constant 0 : i32
    return %c0_i32, %c0_i32_0 : i32, i32
  }
  func.func @transform_2(%arg0: i32) -> (i32, i32) {
    %c0_i32 = arith.constant 0 : i32
    %c0_i32_0 = arith.constant 0 : i32
    %c0_i32_1 = arith.constant 0 : i32
    return %c0_i32, %c0_i32_0 : i32, i32
  }
  func.func @transform_3(%arg0: i32) -> (i32, i32) {
    %c0_i32 = arith.constant 0 : i32
    %c0_i32_0 = arith.constant 0 : i32
    %c0_i32_1 = arith.constant 0 : i32
    return %c0_i32, %c0_i32_0 : i32, i32
  }
  func.func @transform_4(%arg0: i32) -> (i32, i32) {
    %c0_i32 = arith.constant 0 : i32
    %c0_i32_0 = arith.constant 0 : i32
    %c0_i32_1 = arith.constant 0 : i32
    return %c0_i32, %c0_i32_0 : i32, i32
  }
  func.func @transform_5(%arg0: i32) -> (i32, i32) {
    %c0_i32 = arith.constant 0 : i32
    %c0_i32_0 = arith.constant 0 : i32
    %c0_i32_1 = arith.constant 0 : i32
    return %c0_i32, %c0_i32_0 : i32, i32
  }
  func.func @transform_6(%arg0: i32) -> (i32, i32) {
    %c0_i32 = arith.constant 0 : i32
    %c0_i32_0 = arith.constant 0 : i32
    %c0_i32_1 = arith.constant 0 : i32
    return %c0_i32, %c0_i32_0 : i32, i32
  }
  func.func @transform_7(%arg0: i32) -> (i32, i32, i32) {
    %c0_i32 = arith.constant 0 : i32
    %c0_i32_0 = arith.constant 0 : i32
    %c0_i32_1 = arith.constant 0 : i32
    return %arg0, %c0_i32, %c0_i32_0 : i32, i32, i32
  }
}

</mosaic_0001>

<bundles_post_ra>
// kernel: tpu_custom_call.1
= control target key start
LH: loop header
LB: loop body
LE: loop exit
PB: predicated region body
PF: predicated region fallthrough
CT: control target
= control target key end

     0   :  { %vm55_vm0 = vcmask 1043456   ;;  %vm56_vm1 = vcmask 1044480   ;;  %vm48_vm2 = vcmask 72704   ;;  %v366_v3 = vmov 65535   ;;  %s460_s0 = inlined_call_operand.vmem [shape: f32[20,9], index: 0, kind: input, shape index: {}]   ;;  %s461_s1 = inlined_call_operand.vmem [shape: bf16[9,64], index: 1, kind: input, shape index: {}]   ;;  %s462_s2 = inlined_call_operand.vmem [shape: f32[1,64], index: 2, kind: input, shape index: {}]   ;;  %s463_s3 = inlined_call_operand.vmem [shape: bf16[64,32], index: 3, kind: input, shape index: {}]   ;;  %s464_s4 = inlined_call_operand.vmem [shape: f32[1,32], index: 4, kind: input, shape index: {}]   ;;  %s465_s5 = inlined_call_operand.vmem [shape: bf16[1,32], index: 5, kind: input, shape index: {}]   ;;  %s466_s6 = inlined_call_operand.<no memory space> [shape: f32[1,1], index: 6, kind: input, shape index: {}]   ;;  %s467_s7 = inlined_call_operand.hbm [shape: f32[1,1,20], index: 7, kind: output, shape index: {}]  }
   0x1   :  { %v337_v0 = vld [vmem:[%s461_s1] sm:$0x1f]   ;;  %v30_v2 = vld [vmem:[%s460_s0 + $0x8] sm:$0xff]  ;;  %v57_v4 = vsel %vm55_vm0, 4294967295, %v366_v3  ;;  %v31_v6 = vld [vmem:[%s460_s0 + $0x10] sm:$0xf] }
   0x2   :  { %v29_v1 = vld [vmem:[%s460_s0] sm:$0xff]  ;;  %v58_v8 = vsel %vm56_vm1, %v57_v4, 0  ;;  %v339_v9 = vld [vmem:[%s463_s3 + $0x8] sm:$0xff]  }
   0x3   :  { %v32_v5 = vpack.c.bf16 %v30_v2, %v29_v1  ;;  %v338_v7 = vld [vmem:[%s463_s3] sm:$0xff]   ;;  %v60_v10 = vand.u32 %v337_v0, %v58_v8 }
   0x4   :  { %313 = vmatprep.subr.bf16.mxu1 %v338_v7 }
   0x5   :  { %309 = vmatprep.mubr.msk.bf16.mxu0 %vm48_vm2, %v32_v5  ;;  %314 = vmatpush3.bf16.msra.mxu1 %v338_v7 }
   0x6   :  { %13 = vsyncpa [#allocation4], 0  ;;  %307 = vmatprep.subr.bf16.mxu0 %v60_v10  ;;  %v33_v11 = vpack.c.bf16 %v31_v6, %v31_v6  ;;  %315 = vmatprep.subr.bf16.mxu1 %v339_v9  ;;  %v340_v12 = vld [vmem:[%s463_s3 + $0x10] sm:$0xff]   ;;  %v341_v13 = vld [vmem:[%s463_s3 + $0x18] sm:$0xff]   ;;  %vm154_vm3 = vcmask 523264   ;;  %v367_v27 = vmov 0.0   ;;  %v216_v44 = vstv %s466_s6 }
   0x7   :  { %308 = vmatpush3.bf16.msra.mxu0 %v60_v10  ;;  %v283_v14 = vld [vmem:[%s462_s2] ss:$0 sm:$0xff]  ;;  %vm368_vm4 = vmmov 0   ;;  %vm217_vm5 = vcmask 261120   ;;  %s369_s20 = smov [#allocation3]   ;;  %vm267_vm6 = vcmask 155648  }
   0x8   :  { %325 = vmatprep.subr.bf16.mxu0 %v367_v27  ;;  %v287_v28 = vld [vmem:[%s464_s4] ss:$0 sm:$0xff]  ;;  %s275_s21 = sshll.u32 %s369_s20, 4  ;;  %s276_s21 = int_to_ptr.vmem [resolvable:$true] %s275_s21 }
   0x9   :  { %316 = vmatpush3.bf16.msra.mxu1 %v339_v9  ;;  %v212_v43 = vld [vmem:[%s465_s5] sm:$0x1]  ;;  %s342_s22 = scalar_lea.vmem %s276_s21, 16  ;;  %s346_s23 = scalar_lea.vmem %s276_s21, 32 }
   0xa   :  { %310 = vmatmul.mubr.msk.bf16.vlgmr.msra.gmra.mrb[0].mxu0 %vm48_vm2, %v33_v11  ;;  %317 = vmatprep.subr.bf16.mxu1 %v340_v12  ;;  %p343_p0 = scmp.ne.s32.totalorder %s276_s21, %s342_s22  ;;  %p347_p1 = scmp.lt.s32.totalorder %s276_s21, %s276_s21 }
   0xb   :  { %329 = vmatprep.mubr.msk.bf16.mxu0 %vm368_vm4, %v367_v27  ;;  %p348_p2 = scmp.lt.s32.totalorder %s346_s23, %s342_s22 }
   0xd   :  { %318 = vmatpush3.bf16.msra.mxu1 %v340_v12  ;;  %p349_p3 = por %p348_p2, %p347_p1 }
   0xe   :  { %319 = vmatprep.subr.bf16.mxu1 %v341_v13 }
   0xf   :  { %p350_p4 = pnand %p349_p3, %p343_p0 }
  0x11   :  { %320 = vmatpush3.bf16.msra.mxu1 %v341_v13 }
  0xdd   :  { %v311_v15 = vpop.f32.mrb[0].mxu0 }
  0xde   :  { %v105_v16 = vadd.f32 %v311_v15, %v283_v14  ;;  %v96_v17 = vpop.f32.mrb[1].mxu0 }
  0xdf   :  { %v97_v18 = vadd.f32 %v283_v14, %v96_v17  ;;  %v312_v19 = vpop.f32.mrb[2].mxu0 }
  0xe0   :  { %v99_v20 = vpop.f32.mrb[3].mxu0  ;;  %v112_v22 = vmax.f32 %v105_v16, 0.0 }
  0xe1   :  { %v100_v21 = vadd.f32 %v283_v14, %v99_v20  ;;  %v110_v23 = vmax.f32 %v97_v18, 0.0 }
  0xe2   :  { %v114_v26 = vpack.c.bf16 %v112_v22, %v112_v22 }
  0xe3   :  { %v111_v24 = vmax.f32 %v100_v21, 0.0 }
  0xe5   :  { %v113_v25 = vpack.c.bf16 %v111_v24, %v110_v23 }
  0xe7   :  { %321 = vmatprep.mubr.msk.bf16.mxu1 %vm154_vm3, %v113_v25 }
  0xe8   :  { %322 = vmatmul.mubr.msk.bf16.vlgmr.msra.gmra.mrb[0].mxu1 %vm154_vm3, %v114_v26 }
 0x1bb   :  { %v323_v29 = vpop.f32.mrb[0].mxu1 }
 0x1bc   :  { %v195_v30 = vpop.f32.mrb[1].mxu1  ;;  %v204_v35 = vadd.f32 %v323_v29, %v287_v28 }
 0x1bd   :  { %v196_v31 = vadd.f32 %v287_v28, %v195_v30  ;;  %v324_v32 = vpop.f32.mrb[2].mxu1 }
 0x1be   :  { %v198_v33 = vpop.f32.mrb[3].mxu1  ;;  %v211_v39 = vmax.f32 %v204_v35, 0.0 }
 0x1bf   :  { %v199_v34 = vadd.f32 %v287_v28, %v198_v33  ;;  %v209_v36 = vmax.f32 %v196_v31, 0.0 }
 0x1c0   :  { %v214_v41 = vpack.c.bf16 %v211_v39, %v211_v39 }
 0x1c1   :  { %v210_v37 = vmax.f32 %v199_v34, 0.0 }
 0x1c2   :  { %v225_v42 = vsel %vm217_vm5, %v214_v41, 0 }
 0x1c3   :  { %v213_v38 = vpack.c.bf16 %v210_v37, %v209_v36 }
 0x1c5   :  { %v222_v40 = vsel %vm217_vm5, %v213_v38, 0 }
 0x1c6   :  { %326 = vmatpush3.bf16.xpose.msra.mxu0 %v222_v40 }
 0x1c7   :  { %327 = vmatprep.subr.bf16.mxu0 %v367_v27 }
 0x1ce   :  { %328 = vmatpush3.bf16.xpose.msra.mxu0 %v225_v42 }
 0x1d5   :  { %330 = vmatmul.mubr.msk.bf16.vlgmr.msra.gmra.mrb[4].mxu0 %vm217_vm5, %v212_v43 }
 0x2a8   :  { %v261_v45 = vpop.f32.mrb[4].mxu0 }
 0x2a9   :  { %v262_v46 = vadd.f32 %v261_v45, %v216_v44  ;;  %v331_v47 = vpop.f32.mrb[5].mxu0 }
 0x2aa   :  { %v264_v48 = vpop.f32.mrb[6].mxu0 }
 0x2ab   :  { %v332_v49 = vpop.f32.mrb[7].mxu0  ;;  %268 = vst.msk [vmem:[#allocation3] sm:$0x1] %vm267_vm6, %v262_v46 }
 0x2ac   :  { %353 = shalt.err (!%p350_p4)
}
 0x2ad   :  { %s354_s24 = scalar_lea.hbm %s467_s7, 16 }
 0x2ae   :  { %p355_p5 = scmp.ne.s32.totalorder %s467_s7, %s354_s24  ;;  %p358_p6 = scmp.lt.u32.totalorder %s354_s24, %s467_s7 }
 0x2b0   :  { %p360_p7 = pnand %p358_p6, %p355_p5 }
 0x2b2   :  { %363 = shalt.err (!%p360_p7)
}
 0x2b3   :  { %278 = dma.vmem_to_hbm [thread:$0]  %s276_s21, 16, %s467_s7, [#allocation4]  }
 0x2b4   :  { %364 = dma.done.wait [#allocation4], 16  }
 0x2b5   :  { %365 = vsyncadd [#allocation4], 4294967280 }
 0x2b6   :  { %282 = vsyncpa [#allocation4], 1 }

</bundles_post_ra>
